<compile_context>
chip_gen: v6e
topology: v6e:2x2x1
jax: 0.10.0
libtpu: 0.0.40
codegen_flags: <defaults>
</compile_context>

<pallas_src>
import jax
import jax.numpy as jnp
from jax.experimental import pallas as pl
from jax.experimental.pallas import tpu as pltpu


# ---------------------------------------------------------------------------
# Kernels
# ---------------------------------------------------------------------------

def _multiway_fullrow_kernel(u1_ref, u2_ref, o_ref):
    """One grid step per batch tile; whole feature row in VMEM.

    Output tile is (tb, 3*H); the concat is realized by writing three
    lane-dense H-wide slabs at static column offsets 0 / H / 2H.
    """
    u1 = u1_ref[...]
    u2 = u2_ref[...]
    H = u1.shape[-1]
    o_ref[:, 0:H] = jnp.abs(u1 - u2)                 # way3
    o_ref[:, H:2 * H] = u1 * u2                      # way4
    o_ref[:, 2 * H:3 * H] = jnp.maximum(u1 * u1, u2 * u2)  # way5


def _multiway_tiled_kernel(u1_ref, u2_ref, o_ref):
    """3-axis grid (batch, feature, way); used when H is tiled.

    The input (tb, th) block is resident across the innermost `way` axis; each
    way step writes one (tb, th) output slab at its concat offset.
    """
    w = pl.program_id(2)
    u1 = u1_ref[...]
    u2 = u2_ref[...]

    @pl.when(w == 0)
    def _():
        o_ref[...] = jnp.abs(u1 - u2)                # way3

    @pl.when(w == 1)
    def _():
        o_ref[...] = u1 * u2                         # way4

    @pl.when(w == 2)
    def _():
        o_ref[...] = jnp.maximum(u1 * u1, u2 * u2)   # way5


# ---------------------------------------------------------------------------
# Tile sizing
# ---------------------------------------------------------------------------

# Double-buffered working-set budget used to pick tile sizes.  Conservative
# enough for all generations (v7x has 64 MiB physical VMEM).
_VMEM_BUDGET = 32 * 1024 * 1024
# Scoped VMEM limit handed to the compiler (v5e's default is only 16 MiB).
_VMEM_LIMIT = 48 * 1024 * 1024


def _sublane(dtype):
    """Sublane packing factor for dense vregs: 8 for 4-byte, 16 for 2-byte, 32 for 1-byte."""
    return {4: 8, 2: 16, 1: 32}.get(jnp.dtype(dtype).itemsize, 8)


def _pick_tile(total, cap, multiple):
    """Largest tile <= cap that divides `total`, preferring multiples of `multiple`."""
    cap = max(1, min(int(cap), total))
    if total <= cap:
        return total  # single block covering the full dim (always legal)
    t = (cap // multiple) * multiple
    while t >= multiple:
        if total % t == 0:
            return t
        t -= multiple
    # Fallback: any divisor (pays sublane padding, but stays correct).
    for t in range(cap, 0, -1):
        if total % t == 0:
            return t
    return total


# ---------------------------------------------------------------------------
# Wrapper
# ---------------------------------------------------------------------------

def multiway(u1, u2, *, tb=None, th=None):
    """Pallas TPU implementation of MultiWay.forward.

    Args:
      u1, u2: (B, H) arrays, H a multiple of 128.
      tb: optional batch tile (must divide B). Auto-sized from VMEM budget.
      th: optional feature tile (multiple of 128, must divide H). Defaults to
          the full row H when that still allows a sublane-aligned batch tile.
    Returns:
      (B, 3*H) array == concat([|u1-u2|, u1*u2, max(u1^2, u2^2)], axis=1).
    """
    assert u1.shape == u2.shape and u1.dtype == u2.dtype
    B, H = u1.shape
    assert H % 128 == 0, "feature dim must be a multiple of 128 (lane width)"
    dt = jnp.dtype(u1.dtype)
    nbytes = dt.itemsize
    sub = _sublane(dt)

    if th is None:
        # Prefer the full feature row per block as long as a sublane-aligned
        # batch tile still fits the budget; otherwise tile H as well.
        # Full-row working set (2 bufs x (2 inputs + 3H output)) = 10*tb*H*bytes.
        if _VMEM_BUDGET // (10 * H * nbytes) >= sub:
            th = H
        else:
            # Tiled working set = 6*tb*th*bytes with tb = sub at minimum.
            th = _pick_tile(H, _VMEM_BUDGET // (6 * sub * nbytes), 128)
    assert th % 128 == 0 and H % th == 0, "feature tile must be a 128-multiple dividing H"

    if th == H:
        # ----- Path A: 1-D grid over batch, whole row per block -------------
        if tb is None:
            tb = _pick_tile(B, _VMEM_BUDGET // (10 * H * nbytes), sub)
        assert B % tb == 0, "batch must be divisible by the batch tile"
        grid = (B // tb,)
        in_spec = pl.BlockSpec((tb, H), lambda i: (i, 0))
        out_spec = pl.BlockSpec((tb, 3 * H), lambda i: (i, 0))
        kernel = _multiway_fullrow_kernel
        # "parallel" lets the runtime shard the batch axis across TensorCores
        # where the chip has more than one (v7x megacore).
        dims = ("parallel",)
    else:
        # ----- Path B: (batch, feature, way) grid for very large H ----------
        if tb is None:
            tb = _pick_tile(B, _VMEM_BUDGET // (6 * th * nbytes), sub)
        assert B % tb == 0, "batch must be divisible by the batch tile"
        nh = H // th
        grid = (B // tb, nh, 3)
        # Inputs: same (i, j) block for all 3 way-steps -> stays resident in
        # VMEM (no re-DMA) because the innermost axis is `way`.
        in_spec = pl.BlockSpec((tb, th), lambda i, j, w: (i, j))
        # Output column block index = w * nh + j  ->  columns [w*H + j*th, ...),
        # exactly the concat([way3, way4, way5], dim=1) layout.
        out_spec = pl.BlockSpec((tb, th), lambda i, j, w: (i, w * nh + j))
        kernel = _multiway_tiled_kernel
        dims = ("parallel", "arbitrary", "arbitrary")

    return pl.pallas_call(
        kernel,
        out_shape=jax.ShapeDtypeStruct((B, 3 * H), dt),
        grid_spec=pltpu.PrefetchScalarGridSpec(
            num_scalar_prefetch=0,
            grid=grid,
            in_specs=[in_spec, in_spec],
            out_specs=out_spec,
        ),
        compiler_params=pltpu.CompilerParams(
            dimension_semantics=dims,
            vmem_limit_bytes=_VMEM_LIMIT,
        ),
    )(u1, u2)


def multiway_ref(u1, u2):
    way3 = jnp.abs(u1 - u2)
    way4 = u1 * u2
    way5 = jnp.maximum(u1 * u1, u2 * u2)
    return jnp.concatenate([way3, way4, way5], axis=1)


if __name__ == "__main__":
    key = jax.random.PRNGKey(0)
    k1, k2, k3, k4 = jax.random.split(key, 4)

    # --- Path A: full-row blocks, auto batch tile (f32) ---------------------
    B, H = 16, 128
    u1 = jax.random.normal(k1, (B, H), dtype=jnp.float32)
    u2 = jax.random.normal(k2, (B, H), dtype=jnp.float32)
    out = jax.block_until_ready(multiway(u1, u2))
    ref = multiway_ref(u1, u2)
    assert out.shape == (B, 3 * H)
    assert jnp.allclose(out, ref, atol=1e-6, rtol=1e-6)

    # --- Path A: bf16 (sublane-packed batch tile) ----------------------------
    u1b = u1.astype(jnp.bfloat16)
    u2b = u2.astype(jnp.bfloat16)
    outb = jax.block_until_ready(multiway(u1b, u2b))
    refb = multiway_ref(u1b, u2b)
    assert jnp.allclose(outb.astype(jnp.float32), refb.astype(jnp.float32),
                        atol=1e-2, rtol=1e-2)

    # --- Path B: explicit feature tiling (exercises the 3-axis grid) --------
    B2, H2, TH2 = 32, 256, 128
    v1 = jax.random.normal(k3, (B2, H2), dtype=jnp.float32)
    v2 = jax.random.normal(k4, (B2, H2), dtype=jnp.float32)
    out2 = jax.block_until_ready(multiway(v1, v2, th=TH2))
    ref2 = multiway_ref(v1, v2)
    assert out2.shape == (B2, 3 * H2)
    assert jnp.allclose(out2, ref2, atol=1e-6, rtol=1e-6)

    print("KERNEL_OK")
</pallas_src>

<mosaic_0001>
module attributes {stable_mosaic.version = 11 : i64} {
  func.func @_multiway_fullrow_kernel(%arg0: i32, %arg1: memref<16x128xf32, #tpu.memory_space<vmem>>, %arg2: memref<16x128xf32, #tpu.memory_space<vmem>>, %arg3: memref<16x384xf32, #tpu.memory_space<vmem>>) attributes {dimension_semantics = [#tpu.dimension_semantics<parallel>], iteration_bounds = array<i64: 1>, scalar_prefetch = 0 : i64, scratch_operands = 0 : i64, tpu.core_type = #tpu.core_type<tc>, window_params = [{transform_indices = @transform_0, window_bounds = array<i64: 16, 128>}, {transform_indices = @transform_1, window_bounds = array<i64: 16, 128>}, {transform_indices = @transform_2, window_bounds = array<i64: 16, 384>}]} {
    %c0 = arith.constant 0 : index
    %c0_0 = arith.constant 0 : index
    %0 = vector.load %arg1[%c0, %c0_0] : memref<16x128xf32, #tpu.memory_space<vmem>>, vector<16x128xf32>
    %c0_1 = arith.constant 0 : index
    %c0_2 = arith.constant 0 : index
    %1 = vector.load %arg2[%c0_1, %c0_2] : memref<16x128xf32, #tpu.memory_space<vmem>>, vector<16x128xf32>
    %2 = arith.subf %0, %1 : vector<16x128xf32>
    %3 = math.absf %2 : vector<16x128xf32>
    %c0_3 = arith.constant 0 : index
    %c0_4 = arith.constant 0 : index
    %4 = vector.load %arg3[%c0_3, %c0_4] : memref<16x384xf32, #tpu.memory_space<vmem>>, vector<16x128xf32>
    tpu.vector_store %arg3[%c0_3, %c0_4], %3 {strides = array<i32>} : memref<16x384xf32, #tpu.memory_space<vmem>>, vector<16x128xf32>,
    %5 = arith.mulf %0, %1 : vector<16x128xf32>
    %c0_5 = arith.constant 0 : index
    %c128 = arith.constant 128 : index
    %6 = vector.load %arg3[%c0_5, %c128] : memref<16x384xf32, #tpu.memory_space<vmem>>, vector<16x128xf32>
    tpu.vector_store %arg3[%c0_5, %c128], %5 {strides = array<i32>} : memref<16x384xf32, #tpu.memory_space<vmem>>, vector<16x128xf32>,
    %7 = arith.mulf %0, %0 : vector<16x128xf32>
    %8 = arith.mulf %1, %1 : vector<16x128xf32>
    %9 = arith.maximumf %7, %8 : vector<16x128xf32>
    %c0_6 = arith.constant 0 : index
    %c256 = arith.constant 256 : index
    %10 = vector.load %arg3[%c0_6, %c256] : memref<16x384xf32, #tpu.memory_space<vmem>>, vector<16x128xf32>
    tpu.vector_store %arg3[%c0_6, %c256], %9 {strides = array<i32>} : memref<16x384xf32, #tpu.memory_space<vmem>>, vector<16x128xf32>,
    return
  }
  func.func @transform_0(%arg0: i32) -> (i32, i32) {
    %c0_i32 = arith.constant 0 : i32
    %c0_i32_0 = arith.constant 0 : i32
    return %arg0, %c0_i32 : i32, i32
  }
  func.func @transform_1(%arg0: i32) -> (i32, i32) {
    %c0_i32 = arith.constant 0 : i32
    %c0_i32_0 = arith.constant 0 : i32
    return %arg0, %c0_i32 : i32, i32
  }
  func.func @transform_2(%arg0: i32) -> (i32, i32) {
    %c0_i32 = arith.constant 0 : i32
    %c0_i32_0 = arith.constant 0 : i32
    return %arg0, %c0_i32 : i32, i32
  }
}

</mosaic_0001>

<bundles_post_ra>
// kernel: tpu_custom_call.1
= control target key start
LH: loop header
LB: loop body
LE: loop exit
PB: predicated region body
PF: predicated region fallthrough
CT: control target
= control target key end

     0   :  { %7 = vsyncpa [#allocation3], 0  ;;  %s184_s0 = inlined_call_operand.hbm [shape: f32[16,128], index: 0, kind: input, shape index: {}]   ;;  %s185_s1 = inlined_call_operand.hbm [shape: f32[16,128], index: 1, kind: input, shape index: {}]   ;;  %s186_s2 = inlined_call_operand.hbm [shape: f32[16,384], index: 2, kind: output, shape index: {}]  }
   0x1   :  { %8 = vsyncpa [#allocation6], 0 }
   0x2   :  { %9 = vsyncpa [#allocation4], 0  ;;  %s153_s9 = smov [#allocation2]  }
   0x3   :  { %s15_s10 = sshll.u32 %s153_s9, 4  ;;  %s16_s10 = int_to_ptr.vmem [resolvable:$true] %s15_s10 }
   0x4   :  { %s95_s11 = scalar_lea.vmem %s16_s10, 256  ;;  %p100_p1 = scmp.lt.s32.totalorder %s16_s10, %s16_s10 }
   0x5   :  { %p96_p0 = scmp.ne.s32.totalorder %s16_s10, %s95_s11  ;;  %p101_p2 = scmp.lt.s32.totalorder %s95_s11, %s95_s11 }
   0x7   :  { %p102_p3 = por %p101_p2, %p100_p1 }
   0x9   :  { %p103_p4 = pnand %p102_p3, %p96_p0 }
   0xb   :  { %106 = shalt.err (!%p103_p4)
}
   0xc   :  { %s154_s12 = smov 128   ;;  %s155_s13 = smov 8  }
   0xd   :  { %21 = dma.hbm_to_vmem [thread:$0]  %s184_s0, 256, %s16_s10, [#allocation3], %s154_s12, %s154_s12, %s155_s13  }
   0xe   :  { %s156_s16 = smov [#allocation5]  }
   0xf   :  { %s27_s17 = sshll.u32 %s156_s16, 4  ;;  %s28_s17 = int_to_ptr.vmem [resolvable:$true] %s27_s17 }
  0x10   :  { %s115_s18 = scalar_lea.vmem %s28_s17, 256  ;;  %p120_p6 = scmp.lt.s32.totalorder %s28_s17, %s28_s17 }
  0x11   :  { %p116_p5 = scmp.ne.s32.totalorder %s28_s17, %s115_s18  ;;  %p121_p7 = scmp.lt.s32.totalorder %s115_s18, %s115_s18 }
  0x13   :  { %p122_p8 = por %p121_p7, %p120_p6 }
  0x15   :  { %p123_p9 = pnand %p122_p8, %p116_p5 }
  0x17   :  { %126 = shalt.err (!%p123_p9)
}
  0x18   :  { %33 = dma.hbm_to_vmem [thread:$0]  %s185_s1, 256, %s28_s17, [#allocation6], %s154_s12, %s154_s12, %s155_s13  }
  0x19   :  { %147 = dma.done.wait [#allocation3], 256  }
  0x1a   :  { %148 = vsyncadd [#allocation3], 4294967040 }
  0x1b   :  { %149 = dma.done.wait [#allocation6], 256  }
  0x1c   :  { %150 = vsyncadd [#allocation6], 4294967040  ;;  %v40_v0 = vld [vmem:[#allocation2] sm:$0xff]  ;;  %v42_v1 = vld [vmem:[#allocation5] sm:$0xff]  ;;  %s157_s0 = smov [#allocation7]  }
  0x1d   :  { %v41_v2 = vld [vmem:[#allocation2 + $0x8] sm:$0xff]  ;;  %v44_v3 = vsub.f32 %v40_v0, %v42_v1  ;;  %v43_v4 = vld [vmem:[#allocation5 + $0x8] sm:$0xff]  ;;  %v50_v5 = vmul.f32 %v42_v1, %v40_v0  ;;  %v54_v6 = vmul.f32 %v40_v0, %v40_v0  ;;  %v56_v7 = vmul.f32 %v42_v1, %v42_v1  ;;  %s67_s21 = sshll.u32 %s157_s0, 4  ;;  %s68_s21 = int_to_ptr.vmem [resolvable:$true] %s67_s21 }
  0x1e   :  { %v45_v8 = vsub.f32 %v41_v2, %v43_v4  ;;  %v51_v9 = vmul.f32 %v43_v4, %v41_v2  ;;  %v55_v10 = vmul.f32 %v41_v2, %v41_v2  ;;  %v57_v11 = vmul.f32 %v43_v4, %v43_v4  ;;  %s127_s1 = scalar_lea.vmem %s68_s21, 768  ;;  %p132_p11 = scmp.lt.s32.totalorder %s68_s21, %s68_s21 }
  0x1f   :  { %v46_v12 = vand.u32 2147483647, %v44_v3  ;;  %52 = vst [vmem:[#allocation7 + $0x8] sm:$0xff] %v50_v5  ;;  %v58_v13 = vmax.f32 %v54_v6, %v56_v7  ;;  %p128_p10 = scmp.ne.s32.totalorder %s68_s21, %s127_s1  ;;  %p133_p12 = scmp.lt.s32.totalorder %s127_s1, %s127_s1 }
  0x20   :  { %v47_v14 = vand.u32 2147483647, %v45_v8  ;;  %53 = vst [vmem:[#allocation7 + $0x20] sm:$0xff] %v51_v9  ;;  %v59_v15 = vmax.f32 %v55_v10, %v57_v11 }
  0x21   :  { %48 = vst [vmem:[#allocation7] sm:$0xff] %v46_v12  ;;  %60 = vst [vmem:[#allocation7 + $0x10] sm:$0xff] %v58_v13  ;;  %p134_p13 = por %p133_p12, %p132_p11 }
  0x22   :  { %49 = vst [vmem:[#allocation7 + $0x18] sm:$0xff] %v47_v14  ;;  %61 = vst [vmem:[#allocation7 + $0x28] sm:$0xff] %v59_v15 }
  0x23   :  { %p135_p0 = pnand %p134_p13, %p128_p10 }
  0x25   :  { %138 = shalt.err (!%p135_p0)
}
  0x26   :  { %s158_s22 = smov 384   ;;  %s159_s23 = smov 24  }
  0x27   :  { %73 = dma.vmem_to_hbm [thread:$0]  %s68_s21, 768, %s186_s2, [#allocation4], %s158_s22, %s158_s22, %s159_s23  }
  0x28   :  { %151 = dma.done.wait [#allocation4], 768  }
  0x29   :  { %152 = vsyncadd [#allocation4], 4294966528 }
  0x2a   :  { %77 = vsyncpa [#allocation3], 1 }
  0x2b   :  { %78 = vsyncpa [#allocation6], 1 }
  0x2c   :  { %79 = vsyncpa [#allocation4], 1 }

</bundles_post_ra>
